<compile_context>
chip_gen: v7x
topology: tpu7x:2x2x1
jax: 0.10.0
libtpu: 0.0.40
codegen_flags: <defaults>
</compile_context>

<pallas_src>
import functools

import jax
import jax.numpy as jnp
import numpy as np
from jax.experimental import pallas as pl
from jax.experimental.pallas import tpu as pltpu


def forest_kernel(x_ref, fm_ref, mean_ref, out_ref, *, depth, n_tree, n_leaf):
    TL = n_tree * n_leaf

    # One lane-dense bf16 MXU pass produces every (layer, tree, leaf) routing
    # factor at once; the branch bit is already folded into the sign of the
    # expanded mask column, so no gather / select is needed in-kernel.
    logits = jnp.dot(x_ref[...], fm_ref[...],
                     preferred_element_type=jnp.float32)        # [tb, depth*TL]
    factors = jax.nn.sigmoid(logits)                            # f32, EUP

    # Routing probability: product over the tree depth (pure VPU).  Start from
    # the layer-0 slice instead of a ones-init (saves one full multiply).
    mu = factors[:, 0:TL]
    for k in range(1, depth):                                   # depth is small & static
        mu = mu * factors[:, k * TL:(k + 1) * TL]

    # Stacked leaf means: one small matmul does every tree's prediction AND the
    # sum over trees.  (V < 128 -> masked partial store; harmless at V=16.)
    out_ref[...] = (
        jnp.dot(mu.astype(mean_ref.dtype), mean_ref[...],
                preferred_element_type=jnp.float32) * (1.0 / n_tree)
    ).astype(out_ref.dtype)


def _round_up(n, m):
    return -(-n // m) * m


def _batch_tiling(B):
    """Return (batch_tile, padded_batch).

    Tile is a multiple of 8 (sublane), capped at 1024; the batch is padded so
    it divides evenly (never an un-tiled giant block).  For B >= 16 the grid
    always has >= 2 steps so the 'parallel' batch axis can shard across v7x's
    two TensorCores (neutral on single-TC v5e/v6e).
    """
    rounded = _round_up(B, 8)
    if rounded <= 8:
        return rounded, rounded
    tb = min(1024, _round_up((rounded + 1) // 2, 8))
    padded = _round_up(rounded, tb)
    return tb, padded


@functools.partial(jax.jit, static_argnames=("depth",))
def forest_forward(x, feature_masks, means, depth):
    """x: [B, F]; feature_masks: [T, F, L]; means: [T, L, V] -> [B, V] f32."""
    B, F = x.shape
    T, _, L = feature_masks.shape
    V = means.shape[-1]
    if L != 2 ** depth:
        raise ValueError(f"n_leaf ({L}) must equal 2**depth ({2 ** depth})")
    TL = T * L
    DTL = depth * TL

    # ---- Wrapper-side (one-time) preprocessing -----------------------------
    # fm_all[f, t*L + l] = feature_masks[t, f, l]
    fm_all = jnp.transpose(feature_masks, (1, 0, 2)).reshape(F, TL)

    # Static routing expansion.  For leaf l of a tree at layer k the decision
    # node is 2^k + (l >> (depth-k)); the branch bit is (l >> (depth-1-k)) & 1
    # (bit=0 -> d, bit=1 -> 1-d, realised as a sign flip on the mask column).
    leaf = np.arange(TL) % L
    tree = np.arange(TL) // L
    cols, signs = [], []
    for k in range(depth):
        node = (1 << k) + (leaf >> (depth - k))
        bit = (leaf >> (depth - 1 - k)) & 1
        cols.append(tree * L + node)
        signs.append(1.0 - 2.0 * bit)
    col_idx = np.concatenate(cols)                              # [depth*TL]
    sign = np.concatenate(signs).astype(np.float32)             # [depth*TL]

    # Expanded, sign-folded mask + stacked leaf means, cast to bf16 for the MXU
    # (f32 accumulation in-kernel).  For production-size forests, pad TL (and
    # F) to a multiple of 128/256 to keep the MXU passes lane-dense.
    fm_exp = (fm_all[:, col_idx] * sign[None, :]).astype(jnp.bfloat16)   # [F, DTL]
    mean_all = means.reshape(TL, V).astype(jnp.bfloat16)                 # [TL, V]

    # Batch: bf16 input, padded so the grid tiles evenly.
    tb, Bp = _batch_tiling(B)
    x_b = x.astype(jnp.bfloat16)
    if Bp != B:
        x_b = jnp.pad(x_b, ((0, Bp - B), (0, 0)))

    # Explicit VMEM budget (generous estimate, capped at v7x's 64 MiB physical).
    vmem_needed = (
        2 * tb * F * 2          # x tile, double-buffered, bf16
        + 2 * F * DTL * 2       # expanded mask (constant block)
        + 2 * TL * V * 2        # leaf means (constant block)
        + 2 * tb * V * 4        # output tile
        + 4 * tb * DTL * 4      # logits / factors / mu temporaries (generous)
    )
    vmem_limit = int(min(64 * 2 ** 20, max(2 * vmem_needed, 32 * 2 ** 20)))
    # TODO(synk): for production-size forests (F*DTL in the tens of MiB) add a
    # TL reduction grid axis with a VMEM accumulator (and single-buffer the
    # constant blocks) instead of keeping one resident [F, DTL] block.

    kernel = functools.partial(forest_kernel, depth=depth, n_tree=T, n_leaf=L)
    out = pl.pallas_call(
        kernel,
        out_shape=jax.ShapeDtypeStruct((Bp, V), jnp.float32),
        grid_spec=pltpu.PrefetchScalarGridSpec(
            num_scalar_prefetch=0,
            grid=(Bp // tb,),
            in_specs=[
                pl.BlockSpec((tb, F), lambda b: (b, 0)),    # x, batch-tiled
                pl.BlockSpec((F, DTL), lambda b: (0, 0)),   # constant block: fetched once, stays resident
                pl.BlockSpec((TL, V), lambda b: (0, 0)),    # constant block
            ],
            out_specs=pl.BlockSpec((tb, V), lambda b: (b, 0)),
        ),
        compiler_params=pltpu.CompilerParams(
            dimension_semantics=("parallel",),              # batch axis -> megacore on v7x
            vmem_limit_bytes=vmem_limit,
        ),
    )(x_b, fm_exp, mean_all)
    return out[:B]


def forest_ref(x, feature_masks, means, depth):
    """Pure-JAX reference reproducing the PyTorch loop literally (f32)."""
    B = x.shape[0]
    out = jnp.zeros((B, means.shape[-1]), jnp.float32)
    for t in range(feature_masks.shape[0]):
        d = jax.nn.sigmoid(x @ feature_masks[t])      # [B, L]
        mu = jnp.ones((B, 1), jnp.float32)
        begin = 1
        for k in range(depth):
            n = 2 ** k
            dl = d[:, begin:begin + n]
            mu = jnp.stack([mu * dl, mu * (1.0 - dl)], axis=-1).reshape(B, 2 * n)
            begin += n
        out = out + mu @ means[t]
    return out / feature_masks.shape[0]


if __name__ == "__main__":
    # Small shapes consistent with the module:
    # n_tree=4, tree_depth=3 (-> n_leaf=8), feature_length=32, vector_length=16
    B, F, depth, T, V = 8, 32, 3, 4, 16
    L = 2 ** depth

    key = jax.random.PRNGKey(0)
    keys = jax.random.split(key, 1 + 2 * T)
    kx, tree_keys = keys[0], keys[1:]

    x = jax.random.normal(kx, (B, F), jnp.float32)

    fms, means = [], []
    eye = jnp.eye(F, dtype=jnp.float32)
    for t in range(T):
        kf, km = tree_keys[2 * t], tree_keys[2 * t + 1]
        # feature_mask: F x n_leaf, each column a distinct one-hot feature
        # selector (mirrors np.random.choice without replacement).
        idx = jax.random.permutation(kf, F)[:L]
        fms.append(eye[idx].T)                                  # [F, L]
        # Tree.mean is [n_leaf, vector_length]; use non-trivial values so the
        # numeric check is meaningful.
        means.append(jax.random.normal(km, (L, V), jnp.float32))
    feature_masks = jnp.stack(fms)                              # [T, F, L]
    tree_means = jnp.stack(means)                               # [T, L, V]

    out = forest_forward(x, feature_masks, tree_means, depth=depth)
    out = jax.block_until_ready(out)

    ref = forest_ref(x, feature_masks, tree_means, depth)
    assert out.shape == (B, V)
    # bf16 MXU operands (per perf review) -> loosened tolerance vs f32 reference.
    np.testing.assert_allclose(np.asarray(out), np.asarray(ref),
                               rtol=3e-2, atol=3e-2)
    # TODO(synk): save_flag cache return and update_label_distribution (training-time
    # EM update with matrix inverse/det) are not part of the inference hot path
    # and are not implemented as kernels.
    print("KERNEL_OK")
</pallas_src>

<mosaic_0001>
module attributes {stable_mosaic.version = 11 : i64} {
  func.func @forest_kernel(%arg0: i32, %arg1: memref<8x32xbf16, #tpu.memory_space<vmem>>, %arg2: memref<32x96xbf16, #tpu.memory_space<vmem>>, %arg3: memref<32x16xbf16, #tpu.memory_space<vmem>>, %arg4: memref<8x16xf32, #tpu.memory_space<vmem>>) attributes {dimension_semantics = [#tpu.dimension_semantics<parallel>], iteration_bounds = array<i64: 1>, scalar_prefetch = 0 : i64, scratch_operands = 0 : i64, tpu.core_type = #tpu.core_type<tc>, window_params = [{transform_indices = @transform_0, window_bounds = array<i64: 8, 32>}, {pipeline_mode = #tpu.pipeline_mode<synchronous>, transform_indices = @transform_1, window_bounds = array<i64: 32, 96>}, {pipeline_mode = #tpu.pipeline_mode<synchronous>, transform_indices = @transform_2, window_bounds = array<i64: 32, 16>}, {transform_indices = @transform_3, window_bounds = array<i64: 8, 16>}]} {
    %c0 = arith.constant 0 : index
    %c0_0 = arith.constant 0 : index
    %0 = vector.load %arg1[%c0, %c0_0] : memref<8x32xbf16, #tpu.memory_space<vmem>>, vector<8x32xbf16>
    %c0_1 = arith.constant 0 : index
    %c0_2 = arith.constant 0 : index
    %1 = vector.load %arg2[%c0_1, %c0_2] : memref<32x96xbf16, #tpu.memory_space<vmem>>, vector<32x96xbf16>
    %cst = arith.constant dense<0.000000e+00> : vector<8x96xf32>
    %2 = tpu.matmul %0, %1, %cst {dimension_numbers = #tpu.dot_dimension_numbers<[1], [0], [0], [1], [0, 0, 1, 1], [], []>} : vector<8x32xbf16>, vector<32x96xbf16>, vector<8x96xf32> -> vector<8x96xf32>
    %3 = arith.negf %2 : vector<8x96xf32>
    %4 = math.exp %3 : vector<8x96xf32>
    %cst_3 = arith.constant 1.000000e+00 : f32
    %5 = vector.broadcast %cst_3 : f32 to vector<8x96xf32>
    %6 = arith.addf %5, %4 : vector<8x96xf32>
    %7 = arith.divf %5, %6 : vector<8x96xf32>
    %8 = vector.extract_strided_slice %7 {offsets = [0, 0], sizes = [8, 32], strides = [1, 1]} : vector<8x96xf32> to vector<8x32xf32>
    %9 = vector.extract_strided_slice %7 {offsets = [0, 32], sizes = [8, 32], strides = [1, 1]} : vector<8x96xf32> to vector<8x32xf32>
    %10 = arith.mulf %8, %9 : vector<8x32xf32>
    %11 = vector.extract_strided_slice %7 {offsets = [0, 64], sizes = [8, 32], strides = [1, 1]} : vector<8x96xf32> to vector<8x32xf32>
    %12 = arith.mulf %10, %11 : vector<8x32xf32>
    %13 = arith.truncf %12 : vector<8x32xf32> to vector<8x32xbf16>
    %c0_4 = arith.constant 0 : index
    %c0_5 = arith.constant 0 : index
    %14 = vector.load %arg3[%c0_4, %c0_5] : memref<32x16xbf16, #tpu.memory_space<vmem>>, vector<32x16xbf16>
    %cst_6 = arith.constant dense<0.000000e+00> : vector<8x16xf32>
    %15 = tpu.matmul %13, %14, %cst_6 {dimension_numbers = #tpu.dot_dimension_numbers<[1], [0], [0], [1], [0, 0, 1, 1], [], []>} : vector<8x32xbf16>, vector<32x16xbf16>, vector<8x16xf32> -> vector<8x16xf32>
    %cst_7 = arith.constant 2.500000e-01 : f32
    %16 = vector.broadcast %cst_7 : f32 to vector<8x16xf32>
    %17 = arith.mulf %15, %16 : vector<8x16xf32>
    %c0_8 = arith.constant 0 : index
    %c0_9 = arith.constant 0 : index
    %18 = vector.load %arg4[%c0_8, %c0_9] : memref<8x16xf32, #tpu.memory_space<vmem>>, vector<8x16xf32>
    tpu.vector_store %arg4[%c0_8, %c0_9], %17 {strides = array<i32>} : memref<8x16xf32, #tpu.memory_space<vmem>>, vector<8x16xf32>,
    return
  }
  func.func @transform_0(%arg0: i32) -> (i32, i32) {
    %c0_i32 = arith.constant 0 : i32
    %c0_i32_0 = arith.constant 0 : i32
    return %arg0, %c0_i32 : i32, i32
  }
  func.func @transform_1(%arg0: i32) -> (i32, i32) {
    %c0_i32 = arith.constant 0 : i32
    %c0_i32_0 = arith.constant 0 : i32
    %c0_i32_1 = arith.constant 0 : i32
    return %c0_i32, %c0_i32_0 : i32, i32
  }
  func.func @transform_2(%arg0: i32) -> (i32, i32) {
    %c0_i32 = arith.constant 0 : i32
    %c0_i32_0 = arith.constant 0 : i32
    %c0_i32_1 = arith.constant 0 : i32
    return %c0_i32, %c0_i32_0 : i32, i32
  }
  func.func @transform_3(%arg0: i32) -> (i32, i32) {
    %c0_i32 = arith.constant 0 : i32
    %c0_i32_0 = arith.constant 0 : i32
    return %arg0, %c0_i32 : i32, i32
  }
}

</mosaic_0001>

<bundles_post_ra>
// kernel: forest_forward.1
= control target key start
LH: loop header
LB: loop body
LE: loop exit
PB: predicated region body
PF: predicated region fallthrough
CT: control target
= control target key end

     0   :  { %v235_v1 = vmov 0.0   ;;  %vm236_vm0 = vmmov 0   ;;  %s289_s0 = inlined_call_operand.vmem [shape: bf16[8,32], index: 0, kind: input, shape index: {}]   ;;  %s290_s1 = inlined_call_operand.vmem [shape: bf16[32,96], index: 1, kind: input, shape index: {}]   ;;  %s291_s2 = inlined_call_operand.vmem [shape: bf16[32,16], index: 2, kind: input, shape index: {}]   ;;  %s292_s3 = inlined_call_operand.hbm [shape: f32[8,16], index: 3, kind: output, shape index: {}]  }
   0x1   :  { %v203_v0 = vld [vmem:[%s290_s1] sm:$0xff]   ;;  %182 = vmatprep.subr.bf16.mxu0 %v235_v1  ;;  %190 = vmatprep.subr.bf16.mxu1 %v235_v1  ;;  %v204_v2 = vld [vmem:[%s290_s1 + $0x8] sm:$0xff]  }
   0x2   :  { %183 = vmatpush3.bf16.msra.mxu0 %v203_v0  ;;  %186 = vmatprep.mubr.msk.bf16.mxu0 %vm236_vm0, %v235_v1 }
   0x3   :  { %184 = vmatprep.subr.bf16.mxu0 %v235_v1  ;;  %194 = vmatprep.mubr.msk.bf16.mxu1 %vm236_vm0, %v235_v1 }
   0x4   :  { %8 = vsyncpa [#allocation3], 0  ;;  %v16_v3 = vld [vmem:[%s289_s0] sm:$0xf]  ;;  %vm33_vm1 = vcmask 261120   ;;  %v206_v12 = vld [vmem:[%s291_s2 + $0x8] sm:$0xff]  }
   0x5   :  { %v205_v10 = vld [vmem:[%s291_s2] sm:$0xff]   ;;  %s237_s20 = smov 96   ;;  %s238_s21 = smov 64   ;;  %vm153_vm2 = vcmask 130048  }
   0x6   :  { %185 = vmatpush3.bf16.msra.mxu0 %v204_v2  ;;  %191 = vmatpush3.bf16.msra.mxu1 %v205_v10  ;;  %s239_s22 = smov [#allocation2]  }
   0x7   :  { %192 = vmatprep.subr.bf16.mxu1 %v235_v1  ;;  %s161_s23 = sshll.u32 %s239_s22, 4  ;;  %s162_s23 = int_to_ptr.vmem [resolvable:$true] %s161_s23 }
   0x8   :  { %s211_s2 = scalar_lea.vmem %s162_s23, 128  ;;  %p216_p1 = scmp.lt.s32.totalorder %s162_s23, %s162_s23 }
   0x9   :  { %187 = vmatmul.mubr.msk.bf16.vlgmr.msra.gmra.mrb[0].mxu0 %vm33_vm1, %v16_v3  ;;  %p212_p0 = scmp.ne.s32.totalorder %s162_s23, %s211_s2  ;;  %p217_p2 = scmp.lt.s32.totalorder %s211_s2, %s211_s2 }
   0xa   :  { %193 = vmatpush3.bf16.msra.mxu1 %v206_v12 }
   0xb   :  { %p218_p3 = por %p217_p2, %p216_p1 }
   0xd   :  { %p219_p4 = pnand %p218_p3, %p212_p0 }
  0xdc   :  { %v71_v4 = vpop.f32.mrb[0].mxu0 }
  0xdd   :  { %v172_v5 = vmul.f32 -1.442695, %v71_v4  ;;  %v188_v6 = vpop.f32.mrb[1].mxu0 }
  0xde   :  { %v74_v7 = vpop.f32.mrb[2].mxu0 }
  0xdf   :  { %207 = vpow2.f32 %v172_v5  ;;  %v189_v8 = vpop.f32.mrb[3].mxu0 }
  0xe9   :  { %v208_v9 = vpop.eup %207 }
  0xea   :  { %v80_v11 = vadd.f32 1.0, %v208_v9 }
  0xec   :  { %209 = vrcp.f32 %v80_v11 }
  0xf6   :  { %v210_v13 = vpop.eup %209 }
  0xf7   :  { %84 = vrot.lane.b32.xlu0 %v210_v13, %s237_s20 }
  0xfb   :  { %88 = vrot.lane.b32.xlu0 %v210_v13, %s238_s21 }
 0x169   :  { %v85_v14 = vpop.permute.xlu0 %84 }
 0x16a   :  { %v87_v15 = vmul.f32 %v210_v13, %v85_v14 }
 0x16d   :  { %v89_v16 = vpop.permute.xlu0 %88 }
 0x16e   :  { %v91_v17 = vmul.f32 %v89_v16, %v87_v15 }
 0x170   :  { %v92_v18 = vpack.c.bf16 %v91_v17, %v91_v17 }
 0x172   :  { %195 = vmatmul.mubr.msk.bf16.vlgmr.msra.gmra.mrb[0].mxu1 %vm33_vm1, %v92_v18 }
 0x245   :  { %v146_v19 = vpop.f32.mrb[0].mxu1 }
 0x246   :  { %v152_v20 = vmul.f32 0.25, %v146_v19  ;;  %v196_v21 = vpop.f32.mrb[1].mxu1 }
 0x247   :  { %v149_v22 = vpop.f32.mrb[2].mxu1 }
 0x248   :  { %v197_v23 = vpop.f32.mrb[3].mxu1  ;;  %154 = vst.msk [vmem:[#allocation2] sm:$0xff] %vm153_vm2, %v152_v20 }
 0x249   :  { %222 = shalt.err (!%p219_p4)
}
 0x24a   :  { %s223_s26 = scalar_lea.hbm %s292_s3, 128 }
 0x24b   :  { %p224_p5 = scmp.ne.s32.totalorder %s292_s3, %s223_s26  ;;  %p227_p6 = scmp.lt.u32.totalorder %s223_s26, %s292_s3 }
 0x24d   :  { %p229_p7 = pnand %p227_p6, %p224_p5 }
 0x24f   :  { %232 = shalt.err (!%p229_p7)
}
 0x250   :  { %164 = dma.vmem_to_hbm [thread:$0]  %s162_s23, 128, %s292_s3, [#allocation3]  }
 0x251   :  { %233 = dma.done.wait [#allocation3], 128  }
 0x252   :  { %234 = vsyncadd [#allocation3], 4294967168 }
 0x253   :  { %168 = vsyncpa [#allocation3], 1 }

</bundles_post_ra>
